<compile_context>
chip_gen: v6e
topology: v6e:2x2x1
jax: 0.10.0
libtpu: 0.0.40
codegen_flags: <defaults>
</compile_context>

<pallas_src>
import math
from typing import NamedTuple

import jax
import jax.numpy as jnp
from jax.experimental import pallas as pl
from jax.experimental.pallas import tpu as pltpu


# ----------------------------------------------------------------------------
# Kernels
# ----------------------------------------------------------------------------

def _grn_kernel_masked(x_ref, wt_ref, adj_ref, b_ref, o_ref):
    """out(tm,tn) = sum_k x(tm,tk) @ (wt(tk,tn) * adj(tk,tn)) + bias.

    K is the last ('arbitrary') grid axis; the f32 output tile stays resident
    in VMEM across it and is used directly as the accumulator."""
    k = pl.program_id(2)

    @pl.when(k == 0)
    def _():
        # Seed the accumulator with the (f32) bias, broadcast over rows.
        o_ref[...] = jnp.broadcast_to(b_ref[...], o_ref.shape)

    # int8 {0,1} adjacency -> bf16 mask on the VPU, matmul on the MXU with
    # f32 accumulation straight into the resident output tile.
    w_eff = wt_ref[...] * adj_ref[...].astype(wt_ref.dtype)
    o_ref[...] += jnp.dot(x_ref[...], w_eff,
                          preferred_element_type=jnp.float32)


def _grn_kernel_premasked(x_ref, w_ref, b_ref, o_ref):
    """Same, but the weight was already masked (w = W^T * adj) in a pre-pass."""
    k = pl.program_id(2)

    @pl.when(k == 0)
    def _():
        o_ref[...] = jnp.broadcast_to(b_ref[...], o_ref.shape)

    o_ref[...] += jnp.dot(x_ref[...], w_ref[...],
                          preferred_element_type=jnp.float32)


# ----------------------------------------------------------------------------
# Planning (padding, tiles, VMEM budget) -- computed once at init.
# ----------------------------------------------------------------------------

class Plan(NamedTuple):
    M: int
    K: int
    N: int
    M_pad: int
    K_pad: int
    N_pad: int
    tm: int
    tk: int
    tn: int
    vmem_limit: int


def _ceil_to(x, m):
    return -(-x // m) * m


def _pad_and_tile(dim, base, cap):
    """Pad `dim` to a multiple of `base`; pick a tile <= cap dividing it."""
    padded = _ceil_to(dim, base)
    if padded <= cap:
        return padded, padded
    padded = _ceil_to(dim, cap)          # cap is a multiple of base
    return padded, cap


def _physical_vmem_bytes():
    try:
        return int(pltpu.get_tpu_info().vmem_capacity_bytes)
    except Exception:
        return 64 * 1024 * 1024          # conservative (v7x per-TC) fallback


def make_plan(M, K, N):
    vmem_phys = _physical_vmem_bytes()
    if vmem_phys >= 100 * 1024 * 1024:
        # v5e / v6e: 128 MiB VMEM -> big tiles, lift the old 64 MiB clamp.
        tm_cap, tn_cap, tk_cap = 512, 1024, 1024
        budget = min(vmem_phys, 112 * 1024 * 1024)
    else:
        # v7x: 64 MiB per TensorCore -> leave headroom for Mosaic scratch.
        tm_cap, tn_cap, tk_cap = 512, 512, 512
        budget = min(vmem_phys, 52 * 1024 * 1024)

    M_pad, tm = _pad_and_tile(M, 8, tm_cap)
    N_pad, tn = _pad_and_tile(N, 128, tn_cap)
    K_pad, tk = _pad_and_tile(K, 128, tk_cap)

    # v7x has 2 TensorCores: keep >= 2 blocks on a parallel axis when possible
    # so dimension_semantics=("parallel", ...) actually shards work.
    if vmem_phys < 100 * 1024 * 1024 and M_pad == tm and N_pad == tn \
            and N_pad >= 256:
        tn = (N_pad // 128 // 2) * 128
        while N_pad % tn:
            tn -= 128

    # Double-buffered tiles: x(bf16) + wt(bf16) + adj(int8) + bias(f32)
    # + output/accumulator(f32), plus the in-kernel w_eff bf16 temporary.
    vmem_est = (2 * (tm * tk * 2 + tk * tn * (2 + 1) + tn * 4 + tm * tn * 4)
                + tk * tn * 2)
    vmem_limit = int(min(budget, max(32 * 1024 * 1024, 2 * vmem_est)))
    return Plan(M, K, N, M_pad, K_pad, N_pad, tm, tk, tn, vmem_limit)


# ----------------------------------------------------------------------------
# One-time parameter preparation (transpose / dtype / padding hoisted out of
# the per-call path).
# ----------------------------------------------------------------------------

def prepare_weight(weight, plan):
    """(out_features, in_features) f32 -> padded bf16 W^T of shape (K_pad, N_pad)."""
    wt = jnp.asarray(weight).T.astype(jnp.bfloat16)
    return jnp.pad(wt, ((0, plan.K_pad - plan.K), (0, plan.N_pad - plan.N)))


def prepare_adj(adj, plan):
    """{0,1} adjacency (in_features, out_features) -> padded int8 mask.
    (For a real-valued adj, skip the int8 cast and pass bf16/f32; the kernel
    multiplies by whatever dtype it receives.)"""
    adj_i8 = jnp.asarray(adj).astype(jnp.int8)
    return jnp.pad(adj_i8, ((0, plan.K_pad - plan.K), (0, plan.N_pad - plan.N)))


def prepare_bias(bias, plan):
    b = jnp.asarray(bias).astype(jnp.float32).reshape(1, plan.N)
    return jnp.pad(b, ((0, 0), (0, plan.N_pad - plan.N)))


# ----------------------------------------------------------------------------
# pallas_call builders + jitted forward
# ----------------------------------------------------------------------------

_DIM_SEMANTICS = ("parallel", "parallel", "arbitrary")


def _masked_call(x_p, wt_p, adj_p, b_p, plan):
    n_m = plan.M_pad // plan.tm
    n_n = plan.N_pad // plan.tn
    n_k = plan.K_pad // plan.tk
    cost = pl.CostEstimate(
        flops=2 * plan.M_pad * plan.K_pad * plan.N_pad + plan.M_pad * plan.N_pad,
        transcendentals=0,
        # Actual streamed bytes: x re-read per N tile, W^T+adj re-read per M tile.
        bytes_accessed=(n_n * plan.M_pad * plan.K_pad * 2
                        + n_m * plan.K_pad * plan.N_pad * (2 + 1)
                        + plan.N_pad * 4
                        + plan.M_pad * plan.N_pad * 4))
    return pl.pallas_call(
        _grn_kernel_masked,
        out_shape=jax.ShapeDtypeStruct((plan.M_pad, plan.N_pad), jnp.float32),
        grid_spec=pltpu.PrefetchScalarGridSpec(
            num_scalar_prefetch=0,
            grid=(n_m, n_n, n_k),
            in_specs=[
                pl.BlockSpec((plan.tm, plan.tk), lambda i, j, k: (i, k)),  # x
                pl.BlockSpec((plan.tk, plan.tn), lambda i, j, k: (k, j)),  # W^T
                pl.BlockSpec((plan.tk, plan.tn), lambda i, j, k: (k, j)),  # adj
                pl.BlockSpec((1, plan.tn), lambda i, j, k: (0, j)),        # bias
            ],
            out_specs=pl.BlockSpec((plan.tm, plan.tn), lambda i, j, k: (i, j)),
        ),
        compiler_params=pltpu.CompilerParams(
            dimension_semantics=_DIM_SEMANTICS,
            vmem_limit_bytes=plan.vmem_limit),
        cost_estimate=cost,
    )(x_p, wt_p, adj_p, b_p)


def _premasked_call(x_p, w_p, b_p, plan):
    n_m = plan.M_pad // plan.tm
    n_n = plan.N_pad // plan.tn
    n_k = plan.K_pad // plan.tk
    cost = pl.CostEstimate(
        flops=2 * plan.M_pad * plan.K_pad * plan.N_pad + plan.M_pad * plan.N_pad,
        transcendentals=0,
        bytes_accessed=(n_n * plan.M_pad * plan.K_pad * 2
                        + n_m * plan.K_pad * plan.N_pad * 2
                        + plan.N_pad * 4
                        + plan.M_pad * plan.N_pad * 4))
    return pl.pallas_call(
        _grn_kernel_premasked,
        out_shape=jax.ShapeDtypeStruct((plan.M_pad, plan.N_pad), jnp.float32),
        grid_spec=pltpu.PrefetchScalarGridSpec(
            num_scalar_prefetch=0,
            grid=(n_m, n_n, n_k),
            in_specs=[
                pl.BlockSpec((plan.tm, plan.tk), lambda i, j, k: (i, k)),  # x
                pl.BlockSpec((plan.tk, plan.tn), lambda i, j, k: (k, j)),  # W^T*adj
                pl.BlockSpec((1, plan.tn), lambda i, j, k: (0, j)),        # bias
            ],
            out_specs=pl.BlockSpec((plan.tm, plan.tn), lambda i, j, k: (i, j)),
        ),
        compiler_params=pltpu.CompilerParams(
            dimension_semantics=_DIM_SEMANTICS,
            vmem_limit_bytes=plan.vmem_limit),
        cost_estimate=cost,
    )(x_p, w_p, b_p)


def make_grn_eqtl_forward(plan):
    """Returns a jitted forward(x, wt_p, adj_p, b_p) -> (batch, out_features) f32."""

    @jax.jit
    def forward(x, wt_p, adj_p, b_p):
        M, K = x.shape
        assert M <= plan.M_pad and K == plan.K
        # Only the activation is padded/cast per call (bf16 halves its bytes).
        x_p = jnp.pad(x.astype(jnp.bfloat16),
                      ((0, plan.M_pad - M), (0, plan.K_pad - K)))
        if plan.M_pad > plan.tm:
            # Multiple M tiles: mask the weight once in a fused XLA pre-pass so
            # adj is not re-streamed / re-masked for every M tile.
            w_eff = wt_p * adj_p.astype(wt_p.dtype)
            out_p = _premasked_call(x_p, w_eff, b_p, plan)
        else:
            out_p = _masked_call(x_p, wt_p, adj_p, b_p, plan)
        return out_p[:M, :plan.N]

    return forward


# ----------------------------------------------------------------------------
# Demo / correctness check
# ----------------------------------------------------------------------------

if __name__ == "__main__":
    key = jax.random.PRNGKey(0)
    k_x, k_w, k_b, k_adj = jax.random.split(key, 4)

    batch = 8
    in_features = 32
    out_features = 16

    # Deterministic init mimicking PyTorch reset_parameters:
    #   kaiming_uniform_(weight, a=sqrt(5)) -> bound = 1/sqrt(fan_in)
    #   uniform_(bias, -1/sqrt(fan_in), 1/sqrt(fan_in))
    fan_in = in_features
    bound = 1.0 / math.sqrt(fan_in)
    weight = jax.random.uniform(
        k_w, (out_features, in_features), jnp.float32, -bound, bound)
    bias = jax.random.uniform(
        k_b, (out_features,), jnp.float32, -bound, bound)
    adj = (jax.random.uniform(k_adj, (in_features, out_features)) > 0.5
           ).astype(jnp.float32)
    x = jax.random.normal(k_x, (batch, in_features), jnp.float32)

    # One-time setup: plan + padded/cast parameters (hoisted out of the
    # per-call path).
    plan = make_plan(batch, in_features, out_features)
    wt_p = prepare_weight(weight, plan)      # bf16 W^T, padded
    adj_p = prepare_adj(adj, plan)           # int8 {0,1} mask, padded
    b_p = prepare_bias(bias, plan)           # f32 (1, N_pad)
    grn_eqtl_forward = make_grn_eqtl_forward(plan)

    out = jax.block_until_ready(grn_eqtl_forward(x, wt_p, adj_p, b_p))
    assert out.shape == (batch, out_features)

    # Reference checks of the PyTorch semantics.
    ref_f32 = x @ (weight.T * adj) + bias
    x_bf = x.astype(jnp.bfloat16).astype(jnp.float32)
    w_bf = weight.T.astype(jnp.bfloat16).astype(jnp.float32) * adj
    ref_bf = x_bf @ w_bf + bias
    # Tight check vs the bf16-rounded-operand reference (f32 accumulation).
    assert jnp.allclose(out, ref_bf, atol=1e-3, rtol=1e-3), \
        "mismatch vs bf16-operand reference"
    # Loose check vs the exact f32 reference (bf16 operand rounding only).
    assert jnp.allclose(out, ref_f32, atol=5e-2, rtol=5e-2), \
        "mismatch vs f32 reference"

    print("KERNEL_OK")
</pallas_src>

<mosaic_0001>
module attributes {stable_mosaic.version = 11 : i64} {
  func.func @_grn_kernel_masked(%arg0: i32, %arg1: i32, %arg2: i32, %arg3: memref<8x128xbf16, #tpu.memory_space<vmem>>, %arg4: memref<128x128xbf16, #tpu.memory_space<vmem>>, %arg5: memref<128x128xi8, #tpu.memory_space<vmem>>, %arg6: memref<1x128xf32, #tpu.memory_space<vmem>>, %arg7: memref<8x128xf32, #tpu.memory_space<vmem>>) attributes {dimension_semantics = [#tpu.dimension_semantics<parallel>, #tpu.dimension_semantics<parallel>, #tpu.dimension_semantics<arbitrary>], iteration_bounds = array<i64: 1, 1, 1>, scalar_prefetch = 0 : i64, scratch_operands = 0 : i64, tpu.core_type = #tpu.core_type<tc>, window_params = [{transform_indices = @transform_0, window_bounds = array<i64: 8, 128>}, {transform_indices = @transform_1, window_bounds = array<i64: 128, 128>}, {transform_indices = @transform_2, window_bounds = array<i64: 128, 128>}, {transform_indices = @transform_3, window_bounds = array<i64: 1, 128>}, {transform_indices = @transform_4, window_bounds = array<i64: 8, 128>}]} {
    %c0_i32 = arith.constant 0 : i32
    %0 = arith.cmpi eq, %arg2, %c0_i32 : i32
    %1 = arith.extui %0 : i1 to i32
    %c0_i32_0 = arith.constant 0 : i32
    %2 = arith.cmpi ne, %1, %c0_i32_0 : i32
    scf.if %2 {
      %c0_10 = arith.constant 0 : index
      %c0_11 = arith.constant 0 : index
      %12 = vector.load %arg6[%c0_10, %c0_11] : memref<1x128xf32, #tpu.memory_space<vmem>>, vector<1x128xf32>
      %13 = vector.shape_cast %12 : vector<1x128xf32> to vector<1x128xf32>
      %14 = vector.broadcast %13 : vector<1x128xf32> to vector<8x128xf32>
      %c0_12 = arith.constant 0 : index
      %c0_13 = arith.constant 0 : index
      %15 = vector.load %arg7[%c0_12, %c0_13] : memref<8x128xf32, #tpu.memory_space<vmem>>, vector<8x128xf32>
      tpu.vector_store %arg7[%c0_12, %c0_13], %14 {strides = array<i32>} : memref<8x128xf32, #tpu.memory_space<vmem>>, vector<8x128xf32>,
    } else {
    }
    %c0 = arith.constant 0 : index
    %c0_1 = arith.constant 0 : index
    %3 = vector.load %arg4[%c0, %c0_1] : memref<128x128xbf16, #tpu.memory_space<vmem>>, vector<128x128xbf16>
    %c0_2 = arith.constant 0 : index
    %c0_3 = arith.constant 0 : index
    %4 = vector.load %arg5[%c0_2, %c0_3] : memref<128x128xi8, #tpu.memory_space<vmem>>, vector<128x128xi8>
    %5 = arith.sitofp %4 : vector<128x128xi8> to vector<128x128xbf16>
    %6 = arith.mulf %3, %5 : vector<128x128xbf16>
    %c0_4 = arith.constant 0 : index
    %c0_5 = arith.constant 0 : index
    %7 = vector.load %arg7[%c0_4, %c0_5] : memref<8x128xf32, #tpu.memory_space<vmem>>, vector<8x128xf32>
    %c0_6 = arith.constant 0 : index
    %c0_7 = arith.constant 0 : index
    %8 = vector.load %arg3[%c0_6, %c0_7] : memref<8x128xbf16, #tpu.memory_space<vmem>>, vector<8x128xbf16>
    %cst = arith.constant dense<0.000000e+00> : vector<8x128xf32>
    %9 = tpu.matmul %8, %6, %cst {dimension_numbers = #tpu.dot_dimension_numbers<[1], [0], [0], [1], [0, 0, 1, 1], [], []>} : vector<8x128xbf16>, vector<128x128xbf16>, vector<8x128xf32> -> vector<8x128xf32>
    %10 = arith.addf %7, %9 : vector<8x128xf32>
    %c0_8 = arith.constant 0 : index
    %c0_9 = arith.constant 0 : index
    %11 = vector.load %arg7[%c0_8, %c0_9] : memref<8x128xf32, #tpu.memory_space<vmem>>, vector<8x128xf32>
    tpu.vector_store %arg7[%c0_8, %c0_9], %10 {strides = array<i32>} : memref<8x128xf32, #tpu.memory_space<vmem>>, vector<8x128xf32>,
    return
  }
  func.func @transform_0(%arg0: i32, %arg1: i32, %arg2: i32) -> (i32, i32) {
    %c0_i32 = arith.constant 0 : i32
    return %arg0, %arg2 : i32, i32
  }
  func.func @transform_1(%arg0: i32, %arg1: i32, %arg2: i32) -> (i32, i32) {
    %c0_i32 = arith.constant 0 : i32
    return %arg2, %arg1 : i32, i32
  }
  func.func @transform_2(%arg0: i32, %arg1: i32, %arg2: i32) -> (i32, i32) {
    %c0_i32 = arith.constant 0 : i32
    return %arg2, %arg1 : i32, i32
  }
  func.func @transform_3(%arg0: i32, %arg1: i32, %arg2: i32) -> (i32, i32) {
    %c0_i32 = arith.constant 0 : i32
    %c0_i32_0 = arith.constant 0 : i32
    return %c0_i32, %arg1 : i32, i32
  }
  func.func @transform_4(%arg0: i32, %arg1: i32, %arg2: i32) -> (i32, i32) {
    %c0_i32 = arith.constant 0 : i32
    return %arg0, %arg1 : i32, i32
  }
}

</mosaic_0001>

<bundles_post_ra>
// kernel: forward.1
= control target key start
LH: loop header
LB: loop body
LE: loop exit
PB: predicated region body
PF: predicated region fallthrough
CT: control target
= control target key end

     0   :  { %9 = vsyncpa [#allocation3], 0  ;;  %s454_s0 = inlined_call_operand.vmem [shape: bf16[8,128], index: 0, kind: input, shape index: {}]   ;;  %s455_s1 = inlined_call_operand.hbm [shape: bf16[128,128], index: 1, kind: input, shape index: {}]   ;;  %s456_s2 = inlined_call_operand.hbm [shape: s8[128,128], index: 2, kind: input, shape index: {}]   ;;  %s457_s3 = inlined_call_operand.vmem [shape: f32[1,128], index: 3, kind: input, shape index: {}]   ;;  %s458_s4 = inlined_call_operand.hbm [shape: f32[8,128], index: 4, kind: output, shape index: {}]  }
   0x1   :  { %10 = vsyncpa [#allocation6], 0 }
   0x2   :  { %11 = vsyncpa [#allocation4], 0  ;;  %s396_s15 = smov [#allocation2]  }
   0x3   :  { %s19_s16 = sshll.u32 %s396_s15, 4  ;;  %s20_s16 = int_to_ptr.vmem [resolvable:$true] %s19_s16 }
   0x4   :  { %s338_s17 = scalar_lea.vmem %s20_s16, 1024  ;;  %p343_p1 = scmp.lt.s32.totalorder %s20_s16, %s20_s16 }
   0x5   :  { %p339_p0 = scmp.ne.s32.totalorder %s20_s16, %s338_s17  ;;  %p344_p2 = scmp.lt.s32.totalorder %s338_s17, %s338_s17 }
   0x7   :  { %p345_p3 = por %p344_p2, %p343_p1 }
   0x9   :  { %p346_p4 = pnand %p345_p3, %p339_p0 }
   0xb   :  { %349 = shalt.err (!%p346_p4)
}
   0xc   :  { %s397_s18 = smov 64   ;;  %s398_s19 = smov 4  }
   0xd   :  { %25 = dma.hbm_to_vmem [thread:$0]  %s455_s1, 1024, %s20_s16, [#allocation3], %s397_s18, %s397_s18, %s398_s19  }
   0xe   :  { %s399_s22 = smov [#allocation5]  }
   0xf   :  { %s31_s23 = sshll.u32 %s399_s22, 4  ;;  %s32_s23 = int_to_ptr.vmem [resolvable:$true] %s31_s23 }
  0x10   :  { %s358_s24 = scalar_lea.vmem %s32_s23, 512  ;;  %p363_p6 = scmp.lt.s32.totalorder %s32_s23, %s32_s23 }
  0x11   :  { %p359_p5 = scmp.ne.s32.totalorder %s32_s23, %s358_s24  ;;  %p364_p7 = scmp.lt.s32.totalorder %s358_s24, %s358_s24 }
  0x13   :  { %p365_p8 = por %p364_p7, %p363_p6 }
  0x15   :  { %p366_p9 = pnand %p365_p8, %p359_p5 }
  0x17   :  { %369 = shalt.err (!%p366_p9)
}
  0x18   :  { %s400_s25 = smov 128   ;;  %s401_s26 = smov 8  }
  0x19   :  { %37 = dma.hbm_to_vmem [thread:$0]  %s456_s2, 512, %s32_s23, [#allocation6], %s400_s25, %s400_s25, %s401_s26  }
  0x1a   :  { %390 = dma.done.wait [#allocation3], 1024  }
  0x1b   :  { %391 = vsyncadd [#allocation3], 4294966272 }
  0x1c   :  { %392 = dma.done.wait [#allocation6], 512  }
  0x1d   :  { %393 = vsyncadd [#allocation6], 4294966784  ;;  %v402_v0 = vmov 0.0   ;;  %vm403_vm0 = vmmov 0   ;;  %v78_v1 = vld [vmem:[#allocation5 + $0x18] sm:$0xff]  ;;  %v77_v8 = vld [vmem:[#allocation5 + $0x10] sm:$0xff] }
  0x1e   :  { %301 = vmatprep.subr.bf16.mxu0 %v402_v0  ;;  %317 = vmatprep.mubr.msk.bf16.mxu0 %vm403_vm0, %v402_v0  ;;  %v73_v2 = vld [vmem:[#allocation2 + $0x38] sm:$0xf]  ;;  %v74_v3 = vld [vmem:[#allocation2 + $0x3c] sm:$0xf]  ;;  %v85_v4 = vunpack.c.l.s8.bf16 %v78_v1  ;;  %v86_v5 = vunpack.c.h.s8.bf16 %v78_v1  ;;  %v71_v6 = vld [vmem:[#allocation2 + $0x30] sm:$0xf]  ;;  %v84_v13 = vunpack.c.h.s8.bf16 %v77_v8  ;;  %v83_v14 = vunpack.c.l.s8.bf16 %v77_v8 }
  0x1f   :  { %v72_v7 = vld [vmem:[#allocation2 + $0x34] sm:$0xf]  ;;  %v69_v19 = vld [vmem:[#allocation2 + $0x28] sm:$0xf]  ;;  %v70_v20 = vld [vmem:[#allocation2 + $0x2c] sm:$0xf] }
  0x20   :  { %v282_v9 = vcombine.low %v86_v5, %v86_v5  ;;  %v283_v10 = vcombine.high %v86_v5, %v86_v5  ;;  %v280_v11 = vcombine.low %v85_v4, %v85_v4  ;;  %v281_v12 = vcombine.high %v85_v4, %v85_v4  ;;  %v76_v23 = vld [vmem:[#allocation5 + $0x8] sm:$0xff]  ;;  %v67_v30 = vld [vmem:[#allocation2 + $0x20] sm:$0xf]  ;;  %v68_v32 = vld [vmem:[#allocation2 + $0x24] sm:$0xf]  ;;  %s404_s5 = smov [#allocation7]  }
  0x21   :  { %v278_v21 = vcombine.low %v84_v13, %v84_v13  ;;  %v279_v22 = vcombine.high %v84_v13, %v84_v13  ;;  %v276_v25 = vcombine.low %v83_v14, %v83_v14  ;;  %v277_v26 = vcombine.high %v83_v14, %v83_v14  ;;  %v65_v39 = vld [vmem:[#allocation2 + $0x18] sm:$0xf]  ;;  %v66_v40 = vld [vmem:[#allocation2 + $0x1c] sm:$0xf]  ;;  %v75_v41 = vld [vmem:[#allocation5] sm:$0xff]  ;;  %s257_s6 = sshll.u32 %s404_s5, 4  ;;  %s258_s6 = int_to_ptr.vmem [resolvable:$true] %s257_s6 }
  0x22   :  { %v157_v15 = vmul.bf16 %v282_v9, %v73_v2  ;;  %v158_v16 = vmul.bf16 %v283_v10, %v74_v3  ;;  %v155_v17 = vmul.bf16 %v280_v11, %v71_v6  ;;  %v156_v18 = vmul.bf16 %v281_v12, %v72_v7  ;;  %v63_v47 = vld [vmem:[#allocation2 + $0x10] sm:$0xf]  ;;  %v64_v49 = vld [vmem:[#allocation2 + $0x14] sm:$0xf]  ;;  %v61_v56 = vld [vmem:[#allocation2 + $0x8] sm:$0xf]  ;;  %p375_p11 = scmp.lt.s32.totalorder %s258_s6, %s258_s6 }
  0x23   :  { %v153_v28 = vmul.bf16 %v278_v21, %v69_v19  ;;  %v154_v29 = vmul.bf16 %v279_v22, %v70_v20  ;;  %v82_v31 = vunpack.c.h.s8.bf16 %v76_v23  ;;  %v151_v33 = vmul.bf16 %v276_v25, %v67_v30  ;;  %v62_v57 = vld [vmem:[#allocation2 + $0xc] sm:$0xf]  ;;  %v59_v63 = vld [vmem:[#allocation2] sm:$0xf]  ;;  %v60_v1 = vld [vmem:[#allocation2 + $0x4] sm:$0xf] }
  0x24   :  { %v291_v24 = vcombine.low %v157_v15, %v158_v16  ;;  %v290_v27 = vcombine.low %v155_v17, %v156_v18  ;;  %v81_v34 = vunpack.c.l.s8.bf16 %v76_v23  ;;  %v152_v36 = vmul.bf16 %v277_v26, %v68_v32  ;;  %v160_v6 = vld [vmem:[%s454_s0] sm:$0xf]  ;;  %s370_s7 = scalar_lea.vmem %s258_s6, 128 }
  0x25   :  { %v289_v35 = vcombine.low %v153_v28, %v154_v29  ;;  %v274_v37 = vcombine.low %v82_v31, %v82_v31  ;;  %v275_v38 = vcombine.high %v82_v31, %v82_v31  ;;  %v80_v48 = vunpack.c.h.s8.bf16 %v75_v41  ;;  %v267_v7 = vld [vmem:[%s457_s3] ss:$0 sm:$0xff]  ;;  %p371_p10 = scmp.ne.s32.totalorder %s258_s6, %s370_s7  ;;  %p376_p12 = scmp.lt.s32.totalorder %s370_s7, %s370_s7 }
  0x26   :  { %302 = vmatpush3.bf16.msra.mxu0 %v291_v24  ;;  %v272_v42 = vcombine.low %v81_v34, %v81_v34  ;;  %v273_v43 = vcombine.high %v81_v34, %v81_v34  ;;  %v288_v44 = vcombine.low %v151_v33, %v152_v36  ;;  %v79_v51 = vunpack.c.l.s8.bf16 %v75_v41 }
  0x27   :  { %303 = vmatprep.subr.bf16.mxu0 %v402_v0  ;;  %v149_v45 = vmul.bf16 %v274_v37, %v65_v39  ;;  %v150_v46 = vmul.bf16 %v275_v38, %v66_v40  ;;  %v270_v54 = vcombine.low %v80_v48, %v80_v48  ;;  %v271_v55 = vcombine.high %v80_v48, %v80_v48  ;;  %p377_p13 = por %p376_p12, %p375_p11 }
  0x28   :  { %v147_v50 = vmul.bf16 %v272_v42, %v63_v47  ;;  %v148_v53 = vmul.bf16 %v273_v43, %v64_v49  ;;  %v268_v58 = vcombine.low %v79_v51, %v79_v51  ;;  %v269_v62 = vcombine.high %v79_v51, %v79_v51 }
  0x29   :  { %v287_v52 = vcombine.low %v149_v45, %v150_v46  ;;  %v145_v60 = vmul.bf16 %v270_v54, %v61_v56  ;;  %v146_v61 = vmul.bf16 %v271_v55, %v62_v57  ;;  %p378_p0 = pnand %p377_p13, %p371_p10 }
  0x2a   :  { %304 = vmatpush3.bf16.msra.mxu0 %v290_v27  ;;  %v286_v59 = vcombine.low %v147_v50, %v148_v53  ;;  %v143_v3 = vmul.bf16 %v268_v58, %v59_v63  ;;  %v144_v4 = vmul.bf16 %v269_v62, %v60_v1 }
  0x2b   :  { %305 = vmatprep.subr.bf16.mxu0 %v402_v0  ;;  %v285_v2 = vcombine.low %v145_v60, %v146_v61 }
  0x2c   :  { %v284_v5 = vcombine.low %v143_v3, %v144_v4 }
  0x2e   :  { %306 = vmatpush3.bf16.msra.mxu0 %v289_v35 }
  0x2f   :  { %307 = vmatprep.subr.bf16.mxu0 %v402_v0 }
  0x32   :  { %308 = vmatpush3.bf16.msra.mxu0 %v288_v44 }
  0x33   :  { %309 = vmatprep.subr.bf16.mxu0 %v402_v0 }
  0x36   :  { %310 = vmatpush3.bf16.msra.mxu0 %v287_v52 }
  0x37   :  { %311 = vmatprep.subr.bf16.mxu0 %v402_v0 }
  0x3a   :  { %312 = vmatpush3.bf16.msra.mxu0 %v286_v59 }
  0x3b   :  { %313 = vmatprep.subr.bf16.mxu0 %v402_v0 }
  0x3e   :  { %314 = vmatpush3.bf16.msra.mxu0 %v285_v2 }
  0x3f   :  { %315 = vmatprep.subr.bf16.mxu0 %v402_v0 }
  0x42   :  { %316 = vmatpush3.bf16.msra.mxu0 %v284_v5 }
  0x45   :  { %318 = vmatmul.mubr.bf16.vlgmr.msra.gmra.mxu0 %v160_v6 }
 0x105   :  { %v243_v8 = vpop.f32.mrf.mxu0 }
 0x106   :  { %v249_v9 = vadd.f32 %v267_v7, %v243_v8 }
 0x107   :  { %v319_v10 = vpop.f32.mrf.mxu0 }
 0x108   :  { %250 = vst [vmem:[#allocation7] sm:$0xff] %v249_v9 }
 0x109   :  { %v246_v11 = vpop.f32.mrf.mxu0 }
 0x10a   :  { %381 = shalt.err (!%p378_p0)
}
 0x10b   :  { %260 = dma.vmem_to_hbm [thread:$0]  %s258_s6, 128, %s458_s4, [#allocation4]   ;;  %v320_v0 = vpop.f32.mrf.mxu0 }
 0x10c   :  { %394 = dma.done.wait [#allocation4], 128  }
 0x10d   :  { %395 = vsyncadd [#allocation4], 4294967168 }
 0x10e   :  { %264 = vsyncpa [#allocation3], 1 }
 0x10f   :  { %265 = vsyncpa [#allocation6], 1 }
 0x110   :  { %266 = vsyncpa [#allocation4], 1 }

</bundles_post_ra>
